<compile_context>
chip_gen: v7x
topology: tpu7x:2x2x1
jax: 0.10.0
libtpu: 0.0.40
codegen_flags: <defaults>
</compile_context>

<pallas_src>
import functools

import jax
import jax.numpy as jnp
from jax.experimental import pallas as pl
from jax.experimental.pallas import tpu as pltpu


def gaussian_mlp_kernel(x_ref, w1_ref, b1_ref, w2_ref, b2_ref, w3_ref, b3_ref,
                        out_ref, *, use_bf16_matmul: bool):
    """Fused fc1->relu->fc2->relu->fc3, writing [o | exp(o)] as one wide slab."""
    x = x_ref[...]

    def mm(a, w):
        if use_bf16_matmul:
            # bf16 MXU operands, f32 accumulation (v6e/v7x fast path).
            a = a.astype(jnp.bfloat16)
            w = w.astype(jnp.bfloat16)
        return jnp.dot(a, w, preferred_element_type=jnp.float32)

    h1 = jnp.maximum(mm(x, w1_ref[...]) + b1_ref[...], 0.0)
    h2 = jnp.maximum(mm(h1, w2_ref[...]) + b2_ref[...], 0.0)
    o = mm(h2, w3_ref[...]) + b3_ref[...]

    # Single lane-contiguous store: cols [0:out_dim] = means, [out_dim:] = stds.
    out_ref[...] = jnp.concatenate([o, jnp.exp(o)], axis=-1)


def gaussian_mlp_forward(x, params, *, tile_b=None, use_bf16_matmul=False):
    """Reproduces GaussianMLP.forward semantics with a single fused kernel.

    Returns (mean_x, std_x, mean_y, std_y), each of shape [B, 2] (float32),
    matching:
        mean_std = fc3(relu(fc2(relu(fc1(x))))).view(-1, 2, 2)
        mean_x, mean_y = mean_std[:, 0, :], mean_std[:, 1, :]
        std_x,  std_y  = exp(mean_x), exp(mean_y)
    """
    w1, b1, w2, b2, w3, b3 = params
    B, input_dim = x.shape
    output_dim = w3.shape[1]
    assert output_dim == 4, "GaussianMLP.forward requires output_dim == 4 (view(-1, 2, 2))"

    # Batch tile: one sublane-aligned tile for small B; 512-row tiles for large B
    # (large enough for ~85% of HBM roofline, small enough to stay well under
    # v7x's 32 MiB scoped VMEM with double-buffering).
    if tile_b is None:
        tile_b = min(512, max(8, ((B + 7) // 8) * 8))
    n_tiles = pl.cdiv(B, tile_b)
    B_pad = n_tiles * tile_b
    if B_pad != B:
        x = jnp.pad(x, ((0, B_pad - B), (0, 0)))  # padded rows sliced off below

    slab_dim = 2 * output_dim  # [o | exp(o)]

    kernel = functools.partial(gaussian_mlp_kernel, use_bf16_matmul=use_bf16_matmul)

    # Weights/biases stay VMEM-resident across all batch tiles.
    resident = lambda shape: pl.BlockSpec(shape, lambda i: (0, 0))

    slab = pl.pallas_call(
        kernel,
        out_shape=jax.ShapeDtypeStruct((B_pad, slab_dim), jnp.float32),
        grid=(n_tiles,),
        in_specs=[
            pl.BlockSpec((tile_b, input_dim), lambda i: (i, 0)),  # x: tiled on batch
            resident(w1.shape), resident(b1.shape),
            resident(w2.shape), resident(b2.shape),
            resident(w3.shape), resident(b3.shape),
        ],
        out_specs=pl.BlockSpec((tile_b, slab_dim), lambda i: (i, 0)),
        compiler_params=pltpu.CompilerParams(
            dimension_semantics=("parallel",),  # shard batch tiles across cores
        ),
    )(x, w1, b1, w2, b2, w3, b3)

    slab = slab[:B]
    # Columns are [o0 o1 o2 o3 | e0 e1 e2 e3]; one reshape splits everything:
    #   row -> [[o0,o1],[o2,o3],[e0,e1],[e2,e3]] == [mean_x, mean_y, std_x, std_y]
    r = slab.reshape(B, 4, 2)
    mean_x, mean_y, std_x, std_y = r[:, 0, :], r[:, 1, :], r[:, 2, :], r[:, 3, :]
    return mean_x, std_x, mean_y, std_y


def init_params(key, input_dim, hidden_dim, output_dim):
    """Deterministic synthetic parameters (PyTorch-Linear-style uniform init)."""
    ks = jax.random.split(key, 6)

    def linear(kw, kb, fan_in, fan_out):
        bound = 1.0 / jnp.sqrt(jnp.float32(fan_in))
        # stored as [in, out] so the kernel does x @ W (== torch x @ W_pt.T)
        w = jax.random.uniform(kw, (fan_in, fan_out), jnp.float32, -bound, bound)
        b = jax.random.uniform(kb, (1, fan_out), jnp.float32, -bound, bound)
        return w, b

    w1, b1 = linear(ks[0], ks[1], input_dim, hidden_dim)
    w2, b2 = linear(ks[2], ks[3], hidden_dim, hidden_dim)
    w3, b3 = linear(ks[4], ks[5], hidden_dim, output_dim)
    return (w1, b1, w2, b2, w3, b3)


def reference_forward(x, params):
    """Pure-JAX reference (mirrors the PyTorch forward) for correctness check."""
    w1, b1, w2, b2, w3, b3 = params
    h = jnp.maximum(x @ w1 + b1, 0.0)
    h = jnp.maximum(h @ w2 + b2, 0.0)
    o = h @ w3 + b3
    ms = o.reshape(-1, 2, 2)
    mean_x, mean_y = ms[:, 0, :], ms[:, 1, :]
    return mean_x, jnp.exp(mean_x), mean_y, jnp.exp(mean_y)


if __name__ == "__main__":
    input_dim = 32
    hidden_dim = 32
    output_dim = 4  # required by .view(-1, 2, 2)

    key = jax.random.PRNGKey(0)
    kx1, kx2, kp = jax.random.split(key, 3)
    params = init_params(kp, input_dim, hidden_dim, output_dim)

    # Case 1: small, sublane-aligned batch (single tile, single grid step).
    x1 = jax.random.normal(kx1, (8, input_dim), dtype=jnp.float32)
    outs1 = jax.block_until_ready(gaussian_mlp_forward(x1, params))
    refs1 = reference_forward(x1, params)
    for o, r in zip(outs1, refs1):
        assert o.shape == r.shape == (8, 2)
        assert jnp.allclose(o, r, atol=1e-5, rtol=1e-5)

    # Case 2: batch not a multiple of 8, forced multi-tile grid (exercises
    # padding + batch-tiled BlockSpecs + resident weights).
    x2 = jax.random.normal(kx2, (20, input_dim), dtype=jnp.float32)
    outs2 = jax.block_until_ready(gaussian_mlp_forward(x2, params, tile_b=8))
    refs2 = reference_forward(x2, params)
    for o, r in zip(outs2, refs2):
        assert o.shape == r.shape == (20, 2)
        assert jnp.allclose(o, r, atol=1e-5, rtol=1e-5)

    print("KERNEL_OK")
</pallas_src>

<mosaic_0001>
module attributes {stable_mosaic.version = 11 : i64} {
  func.func @gaussian_mlp_kernel(%arg0: i32, %arg1: memref<8x32xf32, #tpu.memory_space<vmem>>, %arg2: memref<32x32xf32, #tpu.memory_space<vmem>>, %arg3: memref<1x32xf32, #tpu.memory_space<vmem>>, %arg4: memref<32x32xf32, #tpu.memory_space<vmem>>, %arg5: memref<1x32xf32, #tpu.memory_space<vmem>>, %arg6: memref<32x4xf32, #tpu.memory_space<vmem>>, %arg7: memref<1x4xf32, #tpu.memory_space<vmem>>, %arg8: memref<8x8xf32, #tpu.memory_space<vmem>>) attributes {dimension_semantics = [#tpu.dimension_semantics<parallel>], iteration_bounds = array<i64: 1>, scalar_prefetch = 0 : i64, scratch_operands = 0 : i64, tpu.core_type = #tpu.core_type<tc>, window_params = [{transform_indices = @transform_0, window_bounds = array<i64: 8, 32>}, {pipeline_mode = #tpu.pipeline_mode<synchronous>, transform_indices = @transform_1, window_bounds = array<i64: 32, 32>}, {pipeline_mode = #tpu.pipeline_mode<synchronous>, transform_indices = @transform_2, window_bounds = array<i64: 1, 32>}, {pipeline_mode = #tpu.pipeline_mode<synchronous>, transform_indices = @transform_3, window_bounds = array<i64: 32, 32>}, {pipeline_mode = #tpu.pipeline_mode<synchronous>, transform_indices = @transform_4, window_bounds = array<i64: 1, 32>}, {pipeline_mode = #tpu.pipeline_mode<synchronous>, transform_indices = @transform_5, window_bounds = array<i64: 32, 4>}, {pipeline_mode = #tpu.pipeline_mode<synchronous>, transform_indices = @transform_6, window_bounds = array<i64: 1, 4>}, {transform_indices = @transform_7, window_bounds = array<i64: 8, 8>}]} {
    %c0 = arith.constant 0 : index
    %c0_0 = arith.constant 0 : index
    %0 = vector.load %arg1[%c0, %c0_0] : memref<8x32xf32, #tpu.memory_space<vmem>>, vector<8x32xf32>
    %c0_1 = arith.constant 0 : index
    %c0_2 = arith.constant 0 : index
    %1 = vector.load %arg2[%c0_1, %c0_2] : memref<32x32xf32, #tpu.memory_space<vmem>>, vector<32x32xf32>
    %cst = arith.constant dense<0.000000e+00> : vector<8x32xf32>
    %2 = tpu.matmul %0, %1, %cst {dimension_numbers = #tpu.dot_dimension_numbers<[1], [0], [0], [1], [0, 0, 1, 1], [], []>} : vector<8x32xf32>, vector<32x32xf32>, vector<8x32xf32> -> vector<8x32xf32>
    %c0_3 = arith.constant 0 : index
    %c0_4 = arith.constant 0 : index
    %3 = vector.load %arg3[%c0_3, %c0_4] : memref<1x32xf32, #tpu.memory_space<vmem>>, vector<1x32xf32>
    %4 = vector.broadcast %3 : vector<1x32xf32> to vector<8x32xf32>
    %5 = arith.addf %2, %4 : vector<8x32xf32>
    %cst_5 = arith.constant 0.000000e+00 : f32
    %6 = vector.broadcast %cst_5 : f32 to vector<8x32xf32>
    %7 = arith.maximumf %5, %6 : vector<8x32xf32>
    %c0_6 = arith.constant 0 : index
    %c0_7 = arith.constant 0 : index
    %8 = vector.load %arg4[%c0_6, %c0_7] : memref<32x32xf32, #tpu.memory_space<vmem>>, vector<32x32xf32>
    %cst_8 = arith.constant dense<0.000000e+00> : vector<8x32xf32>
    %9 = tpu.matmul %7, %8, %cst_8 {dimension_numbers = #tpu.dot_dimension_numbers<[1], [0], [0], [1], [0, 0, 1, 1], [], []>} : vector<8x32xf32>, vector<32x32xf32>, vector<8x32xf32> -> vector<8x32xf32>
    %c0_9 = arith.constant 0 : index
    %c0_10 = arith.constant 0 : index
    %10 = vector.load %arg5[%c0_9, %c0_10] : memref<1x32xf32, #tpu.memory_space<vmem>>, vector<1x32xf32>
    %11 = vector.broadcast %10 : vector<1x32xf32> to vector<8x32xf32>
    %12 = arith.addf %9, %11 : vector<8x32xf32>
    %cst_11 = arith.constant 0.000000e+00 : f32
    %13 = vector.broadcast %cst_11 : f32 to vector<8x32xf32>
    %14 = arith.maximumf %12, %13 : vector<8x32xf32>
    %c0_12 = arith.constant 0 : index
    %c0_13 = arith.constant 0 : index
    %15 = vector.load %arg6[%c0_12, %c0_13] : memref<32x4xf32, #tpu.memory_space<vmem>>, vector<32x4xf32>
    %cst_14 = arith.constant dense<0.000000e+00> : vector<8x4xf32>
    %16 = tpu.matmul %14, %15, %cst_14 {dimension_numbers = #tpu.dot_dimension_numbers<[1], [0], [0], [1], [0, 0, 1, 1], [], []>} : vector<8x32xf32>, vector<32x4xf32>, vector<8x4xf32> -> vector<8x4xf32>
    %c0_15 = arith.constant 0 : index
    %c0_16 = arith.constant 0 : index
    %17 = vector.load %arg7[%c0_15, %c0_16] : memref<1x4xf32, #tpu.memory_space<vmem>>, vector<1x4xf32>
    %18 = vector.broadcast %17 : vector<1x4xf32> to vector<8x4xf32>
    %19 = arith.addf %16, %18 : vector<8x4xf32>
    %20 = math.exp %19 : vector<8x4xf32>
    %21 = tpu.concatenate %19, %20 in 1 : vector<8x4xf32>, vector<8x4xf32> -> vector<8x8xf32>
    %c0_17 = arith.constant 0 : index
    %c0_18 = arith.constant 0 : index
    %22 = vector.load %arg8[%c0_17, %c0_18] : memref<8x8xf32, #tpu.memory_space<vmem>>, vector<8x8xf32>
    tpu.vector_store %arg8[%c0_17, %c0_18], %21 {strides = array<i32>} : memref<8x8xf32, #tpu.memory_space<vmem>>, vector<8x8xf32>,
    return
  }
  func.func @transform_0(%arg0: i32) -> (i32, i32) {
    %c0_i32 = arith.constant 0 : i32
    %c0_i32_0 = arith.constant 0 : i32
    return %arg0, %c0_i32 : i32, i32
  }
  func.func @transform_1(%arg0: i32) -> (i32, i32) {
    %c0_i32 = arith.constant 0 : i32
    %c0_i32_0 = arith.constant 0 : i32
    %c0_i32_1 = arith.constant 0 : i32
    return %c0_i32, %c0_i32_0 : i32, i32
  }
  func.func @transform_2(%arg0: i32) -> (i32, i32) {
    %c0_i32 = arith.constant 0 : i32
    %c0_i32_0 = arith.constant 0 : i32
    %c0_i32_1 = arith.constant 0 : i32
    return %c0_i32, %c0_i32_0 : i32, i32
  }
  func.func @transform_3(%arg0: i32) -> (i32, i32) {
    %c0_i32 = arith.constant 0 : i32
    %c0_i32_0 = arith.constant 0 : i32
    %c0_i32_1 = arith.constant 0 : i32
    return %c0_i32, %c0_i32_0 : i32, i32
  }
  func.func @transform_4(%arg0: i32) -> (i32, i32) {
    %c0_i32 = arith.constant 0 : i32
    %c0_i32_0 = arith.constant 0 : i32
    %c0_i32_1 = arith.constant 0 : i32
    return %c0_i32, %c0_i32_0 : i32, i32
  }
  func.func @transform_5(%arg0: i32) -> (i32, i32) {
    %c0_i32 = arith.constant 0 : i32
    %c0_i32_0 = arith.constant 0 : i32
    %c0_i32_1 = arith.constant 0 : i32
    return %c0_i32, %c0_i32_0 : i32, i32
  }
  func.func @transform_6(%arg0: i32) -> (i32, i32) {
    %c0_i32 = arith.constant 0 : i32
    %c0_i32_0 = arith.constant 0 : i32
    %c0_i32_1 = arith.constant 0 : i32
    return %c0_i32, %c0_i32_0 : i32, i32
  }
  func.func @transform_7(%arg0: i32) -> (i32, i32) {
    %c0_i32 = arith.constant 0 : i32
    %c0_i32_0 = arith.constant 0 : i32
    return %arg0, %c0_i32 : i32, i32
  }
}

</mosaic_0001>

<bundles_post_ra>
// kernel: tpu_custom_call.1
= control target key start
LH: loop header
LB: loop body
LE: loop exit
PB: predicated region body
PF: predicated region fallthrough
CT: control target
= control target key end

     0   :  { %12 = vsyncpa [#allocation3], 0  ;;  %s621_s0 = inlined_call_operand.hbm [shape: f32[8,32], index: 0, kind: input, shape index: {}]   ;;  %s622_s1 = inlined_call_operand.vmem [shape: f32[32,32], index: 1, kind: input, shape index: {}]   ;;  %s623_s2 = inlined_call_operand.vmem [shape: f32[1,32], index: 2, kind: input, shape index: {}]   ;;  %s624_s3 = inlined_call_operand.hbm [shape: f32[32,32], index: 3, kind: input, shape index: {}]   ;;  %s625_s4 = inlined_call_operand.vmem [shape: f32[1,32], index: 4, kind: input, shape index: {}]   ;;  %s626_s5 = inlined_call_operand.vmem [shape: f32[32,4], index: 5, kind: input, shape index: {}]   ;;  %s627_s6 = inlined_call_operand.vmem [shape: f32[1,4], index: 6, kind: input, shape index: {}]   ;;  %s628_s7 = inlined_call_operand.hbm [shape: f32[8,8], index: 7, kind: output, shape index: {}]  }
   0x1   :  { %13 = vsyncpa [#allocation6], 0 }
   0x2   :  { %14 = vsyncpa [#allocation4], 0  ;;  %s490_s24 = smov [#allocation2]   ;;  %s491_s26 = smov [#allocation5]  }
   0x3   :  { %s21_s25 = sshll.u32 %s490_s24, 4  ;;  %s34_s27 = sshll.u32 %s491_s26, 4  ;;  %s22_s25 = int_to_ptr.vmem [resolvable:$true] %s21_s25  ;;  %s539_s27 = int_to_ptr.vmem [resolvable:$true] %s34_s27 }
   0x4   :  { %s418_s30 = scalar_lea.hbm %s621_s0, 128 }
   0x5   :  { %p419_p0 = scmp.ne.s32.totalorder %s621_s0, %s418_s30  ;;  %p422_p1 = scmp.lt.u32.totalorder %s418_s30, %s621_s0 }
   0x7   :  { %p424_p2 = pnand %p422_p1, %p419_p0 }
   0x9   :  { %427 = shalt.err (!%p424_p2)
}
   0xa   :  { %s428_s12 = scalar_lea.vmem %s22_s25, 128  ;;  %p433_p4 = scmp.lt.s32.totalorder %s22_s25, %s22_s25 }
   0xb   :  { %p429_p3 = scmp.ne.s32.totalorder %s22_s25, %s428_s12  ;;  %p434_p5 = scmp.lt.s32.totalorder %s428_s12, %s428_s12 }
   0xd   :  { %p435_p6 = por %p434_p5, %p433_p4 }
   0xf   :  { %p436_p7 = pnand %p435_p6, %p429_p3 }
  0x11   :  { %439 = shalt.err (!%p436_p7)
}
  0x12   :  { %24 = dma.hbm_to_vmem [thread:$0]  %s621_s0, 128, %s22_s25, [#allocation3]  }
  0x13   :  { %s440_s17 = scalar_lea.hbm %s624_s3, 512 }
  0x14   :  { %p441_p8 = scmp.ne.s32.totalorder %s624_s3, %s440_s17  ;;  %p444_p9 = scmp.lt.u32.totalorder %s440_s17, %s624_s3 }
  0x16   :  { %p446_p10 = pnand %p444_p9, %p441_p8 }
  0x18   :  { %449 = shalt.err (!%p446_p10)
}
  0x19   :  { %s450_s22 = scalar_lea.vmem %s539_s27, 512  ;;  %p455_p12 = scmp.lt.s32.totalorder %s539_s27, %s539_s27 }
  0x1a   :  { %p451_p11 = scmp.ne.s32.totalorder %s539_s27, %s450_s22  ;;  %p456_p13 = scmp.lt.s32.totalorder %s450_s22, %s450_s22 }
  0x1c   :  { %p457_p0 = por %p456_p13, %p455_p12 }
  0x1e   :  { %p458_p1 = pnand %p457_p0, %p451_p11 }
  0x20   :  { %461 = shalt.err (!%p458_p1)
}
  0x21   :  { %s492_s0 = smov 128   ;;  %s493_s23 = smov 8  }
  0x22   :  { %40 = dma.hbm_to_vmem [thread:$0]  %s624_s3, 512, %s539_s27, [#allocation6], %s492_s0, %s492_s0, %s493_s23  }
  0x23   :  { %484 = dma.done.wait [#allocation3], 128  }
  0x24   :  { %485 = vsyncadd [#allocation3], 4294967168 }
  0x25   :  { %486 = dma.done.wait [#allocation6], 512  }
  0x26   :  { %487 = vsyncadd [#allocation6], 4294966784  ;;  %v494_v0 = vmov 0.0|0.0   ;;  %vm495_vm0 = vmmov 0   ;;  %v496_v1 = vmov 0.0   ;;  %v54_v2 = vld [vmem:[%s622_s1] sm:$0xff] }
  0x27   :  { %389 = vmatprep.subr.bf16.mxu0 %v494_v0  ;;  %364 = vmatprep.mubr.msk.f32.mxu0 %vm495_vm0, %v496_v1  ;;  %v55_v3 = vld [vmem:[%s622_s1 + $0x8] sm:$0xff]  ;;  %v56_v4 = vld [vmem:[%s622_s1 + $0x10] sm:$0xff]  ;;  %v57_v6 = vld [vmem:[%s622_s1 + $0x18] sm:$0xff]  ;;  %vm65_vm1 = vcmask 261120   ;;  %s498_s22 = smov [#allocation7]   ;;  %vm315_vm2 = vcmask 31744  }
  0x28   :  { %395 = vmatprep.subr.bf16.mxu1 %v494_v0  ;;  %375 = vmatprep.mubr.msk.f32.mxu1 %vm495_vm0, %v496_v1  ;;  %v390_v5 = vpack.c.bf16 %v55_v3, %v54_v2  ;;  %v140_v7 = vld [vmem:[#allocation5] sm:$0xff]  ;;  %v141_v8 = vld [vmem:[#allocation5 + $0x8] sm:$0xff]  ;;  %v393_v9 = vpack.c.bf16 %v57_v6, %v56_v4  ;;  %v53_v11 = vld [vmem:[#allocation2] sm:$0xff]  ;;  %vm317_vm3 = vcmask 64512  }
  0x29   :  { %v396_v10 = vpack.c.bf16 %v141_v8, %v140_v7  ;;  %v142_v12 = vld [vmem:[#allocation5 + $0x10] sm:$0xff]  ;;  %v143_v13 = vld [vmem:[#allocation5 + $0x18] sm:$0xff]  ;;  %v226_v16 = vld [vmem:[%s626_s5 + $0x8] sm:$0xff] }
  0x2a   :  { %391 = vmatpush3.bf16.msra.mxu0 %v390_v5  ;;  %v399_v14 = vpack.c.bf16 %v143_v13, %v142_v12  ;;  %v225_v15 = vld [vmem:[%s626_s5] sm:$0xff]  ;;  %v227_v23 = vld [vmem:[%s626_s5 + $0x10] sm:$0xff]  ;;  %v228_v24 = vld [vmem:[%s626_s5 + $0x18] sm:$0xff]  ;;  %s497_s5 = smov 4  }
  0x2b   :  { %392 = vmatprep.subr.bf16.mxu0 %v494_v0  ;;  %397 = vmatpush3.bf16.msra.mxu1 %v396_v10  ;;  %v402_v17 = vpack.c.bf16 %v226_v16, %v225_v15  ;;  %v335_v18 = vld [vmem:[%s623_s2] ss:$0 sm:$0xff]  ;;  %v405_v25 = vpack.c.bf16 %v228_v24, %v227_v23 }
  0x2c   :  { %398 = vmatprep.subr.bf16.mxu1 %v494_v0  ;;  %v337_v26 = vld [vmem:[%s625_s4] ss:$0 sm:$0xff]  ;;  %s325_s4 = sshll.u32 %s498_s22, 4  ;;  %s326_s4 = int_to_ptr.vmem [resolvable:$true] %s325_s4 }
  0x2d   :  { %v339_v31 = vld [vmem:[%s627_s6] ss:$0 sm:$0xff]  ;;  %s462_s0 = scalar_lea.vmem %s326_s4, 128  ;;  %p467_p3 = scmp.lt.s32.totalorder %s326_s4, %s326_s4 }
  0x2e   :  { %394 = vmatpush3.bf16.msra.mxu0 %v393_v9  ;;  %p463_p2 = scmp.ne.s32.totalorder %s326_s4, %s462_s0  ;;  %p468_p4 = scmp.lt.s32.totalorder %s462_s0, %s462_s0 }
  0x2f   :  { %401 = vmatprep.subr.bf16.mxu0 %v494_v0  ;;  %400 = vmatpush3.bf16.msra.mxu1 %v399_v14 }
  0x30   :  { %p469_p5 = por %p468_p4, %p467_p3 }
  0x31   :  { %365 = vmatmul.mubr.msk.f32.vlgmr.msra.gmra.mrb[0].mxu0 %vm65_vm1, %v53_v11 }
  0x32   :  { %386 = vmatprep.mubr.msk.f32.mxu0 %vm495_vm0, %v496_v1  ;;  %403 = vmatpush3.bf16.msra.mxu0 %v402_v17  ;;  %p470_p6 = pnand %p469_p5, %p463_p2 }
  0x33   :  { %404 = vmatprep.subr.bf16.mxu0 %v494_v0 }
  0x36   :  { %406 = vmatpush3.bf16.msra.mxu0 %v405_v25 }
 0x104   :  { %v135_v19 = vpop.f32.mrb[0].mxu0 }
 0x105   :  { %v136_v20 = vadd.f32 %v335_v18, %v135_v19  ;;  %v366_v21 = vpop.f32.mrb[1].mxu0 }
 0x107   :  { %v139_v22 = vmax.f32 %v136_v20, 0.0 }
 0x109   :  { %376 = vmatmul.mubr.msk.f32.vlgmr.msra.gmra.mrb[0].mxu1 %vm65_vm1, %v139_v22 }
 0x1dc   :  { %v220_v27 = vpop.f32.mrb[0].mxu1 }
 0x1dd   :  { %v221_v28 = vadd.f32 %v337_v26, %v220_v27  ;;  %v377_v29 = vpop.f32.mrb[1].mxu1 }
 0x1df   :  { %v224_v30 = vmax.f32 %v221_v28, 0.0 }
 0x1e1   :  { %387 = vmatmul.mubr.msk.f32.vlgmr.msra.gmra.mrb[2].mxu0 %vm65_vm1, %v224_v30 }
 0x2b4   :  { %v305_v32 = vpop.f32.mrb[2].mxu0 }
 0x2b5   :  { %v306_v33 = vadd.f32 %v339_v31, %v305_v32  ;;  %v388_v34 = vpop.f32.mrb[3].mxu0 }
 0x2b7   :  { %v309_v35 = vmul.f32 1.442695, %v306_v33 }
 0x2b9   :  { %416 = vpow2.f32 %v309_v35 }
 0x2c3   :  { %v417_v36 = vpop.eup %416 }
 0x2c4   :  { %312 = vrot.lane.b32.xlu0 %v417_v36, %s497_s5 }
 0x336   :  { %v313_v37 = vpop.permute.xlu0 %312 }
 0x337   :  { %v316_v38 = vsel %vm315_vm2, %v306_v33, %v313_v37 }
 0x338   :  { %318 = vst.msk [vmem:[#allocation7] sm:$0xff] %vm317_vm3, %v316_v38 }
 0x339   :  { %473 = shalt.err (!%p470_p6)
}
 0x33a   :  { %s474_s24 = scalar_lea.hbm %s628_s7, 128 }
 0x33b   :  { %p475_p7 = scmp.ne.s32.totalorder %s628_s7, %s474_s24  ;;  %p478_p8 = scmp.lt.u32.totalorder %s474_s24, %s628_s7 }
 0x33d   :  { %p480_p9 = pnand %p478_p8, %p475_p7 }
 0x33f   :  { %483 = shalt.err (!%p480_p9)
}
 0x340   :  { %328 = dma.vmem_to_hbm [thread:$0]  %s326_s4, 128, %s628_s7, [#allocation4]  }
 0x341   :  { %488 = dma.done.wait [#allocation4], 128  }
 0x342   :  { %489 = vsyncadd [#allocation4], 4294967168 }
 0x343   :  { %332 = vsyncpa [#allocation3], 1 }
 0x344   :  { %333 = vsyncpa [#allocation6], 1 }
 0x345   :  { %334 = vsyncpa [#allocation4], 1 }

</bundles_post_ra>
